<compile_context>
chip_gen: v5e
topology: v5e:2x2
jax: 0.10.0
libtpu: 0.0.40
codegen_flags: <defaults>
</compile_context>

<pallas_src>
import jax
import jax.numpy as jnp
from jax.experimental import pallas as pl
from jax.experimental.pallas import tpu as pltpu


def _matmul_kernel(x_ref, w_ref, o_ref, acc_ref):
    # x_ref: (tm, tk)   w_ref: (tk, tn)   o_ref: (tm, tn)   acc_ref: (tm, tn) f32
    @pl.when(pl.program_id(2) == 0)
    def _():
        acc_ref[...] = jnp.zeros_like(acc_ref)

    acc_ref[...] += jnp.dot(
        x_ref[...], w_ref[...], preferred_element_type=jnp.float32
    )

    @pl.when(pl.program_id(2) == pl.num_programs(2) - 1)
    def _():
        o_ref[...] = acc_ref[...].astype(o_ref.dtype)


def _pick_tile(full, pref, align):
    """Largest tile <= pref that divides `full`; aligned to `align` unless full-extent."""
    if full <= pref:
        return full  # full-extent block is always a legal block shape
    t = (pref // align) * align
    while t >= align:
        if full % t == 0:
            return t
        t -= align
    return full


def embedding_forward(x, weight):
    """x: (B, S, D_in) float32; weight: (E, D_in) (PyTorch Linear layout, out x in).

    Returns (B, E, S) float32, identical to:
        out = x @ weight.T ; out = out.transpose(1, 2)
    """
    B, S, D_in = x.shape
    E, D_in_w = weight.shape
    assert D_in == D_in_w

    # Fold batch into M so the MXU sees one (M, K) x (K, N) problem instead of B tiny ones.
    M = B * S
    x2 = x.reshape(M, D_in)
    w = weight.T  # (D_in, E) so the kernel is a plain x @ w

    tm = _pick_tile(M, 256, 8)      # sublane-aligned M tile
    tk = _pick_tile(D_in, 512, 128)  # lane-aligned K tile
    tn = _pick_tile(E, 256, 128)     # lane-aligned N tile (lane-dense output stores)

    grid = (M // tm, E // tn, D_in // tk)

    itemsize = jnp.dtype(x.dtype).itemsize
    cost = pl.CostEstimate(
        flops=2 * M * D_in * E,
        transcendentals=0,
        bytes_accessed=(x2.size + w.size + M * E) * itemsize,
    )

    # NOTE: at the tiny demo sizes below, a plain jnp.einsum would beat the fixed
    # Pallas launch cost; the Pallas path is what you'd use at realistic S/E/D_in.
    out = pl.pallas_call(
        _matmul_kernel,
        out_shape=jax.ShapeDtypeStruct((M, E), x.dtype),
        grid_spec=pltpu.PrefetchScalarGridSpec(
            num_scalar_prefetch=0,
            grid=grid,
            in_specs=[
                # x tile streams per (i, k); weight tile is constant along the M axis.
                pl.BlockSpec((tm, tk), lambda i, j, k: (i, k)),
                pl.BlockSpec((tk, tn), lambda i, j, k: (k, j)),
            ],
            out_specs=pl.BlockSpec((tm, tn), lambda i, j, k: (i, j)),
            scratch_shapes=[pltpu.VMEM((tm, tn), jnp.float32)],
        ),
        compiler_params=pltpu.CompilerParams(
            dimension_semantics=("parallel", "parallel", "arbitrary"),
        ),
        cost_estimate=cost,
    )(x2, w)

    # (M, E) -> (B, S, E) -> (B, E, S): the module's transpose(1, 2) is a wrapper-side
    # layout op (handled by XLA), not an in-kernel XLU transpose.
    return jnp.transpose(out.reshape(B, S, E), (0, 2, 1))


if __name__ == "__main__":
    # Module hyper-params (small, TPU-friendly):
    input_size = 32      # D_in
    embedding_dim = 32   # E
    sequences = 8        # S
    batch = 2            # B

    key = jax.random.PRNGKey(0)
    kx, kw = jax.random.split(key)

    # Deterministic synthetic parameters (PyTorch Linear weight shape: (out, in)).
    weight = jax.random.normal(kw, (embedding_dim, input_size), dtype=jnp.float32) * 0.1
    x = jax.random.normal(kx, (batch, sequences, input_size), dtype=jnp.float32)

    out = jax.block_until_ready(embedding_forward(x, weight))

    # Reference (plain JAX) check of the exact PyTorch semantics.
    ref = jnp.einsum("bsd,ed->bse", x, weight)   # Linear, bias=False
    ref = jnp.transpose(ref, (0, 2, 1))          # sequence_first=False -> transpose(1, 2)
    assert out.shape == (batch, embedding_dim, sequences)
    assert jnp.allclose(out, ref, atol=1e-5, rtol=1e-5)

    # TODO(synk): axis != 0 branch (per-feature Linear over the sequence dim, a list of
    # input_size independent (S -> E) projections) is not implemented here.

    print("KERNEL_OK")
</pallas_src>

<mosaic_0001>
module attributes {stable_mosaic.version = 11 : i64} {
  func.func @_matmul_kernel(%arg0: i32, %arg1: i32, %arg2: i32, %arg3: memref<16x32xf32, #tpu.memory_space<vmem>>, %arg4: memref<32x32xf32, #tpu.memory_space<vmem>>, %arg5: memref<16x32xf32, #tpu.memory_space<vmem>>, %arg6: memref<16x32xf32, #tpu.memory_space<vmem>>) attributes {dimension_semantics = [#tpu.dimension_semantics<parallel>, #tpu.dimension_semantics<parallel>, #tpu.dimension_semantics<arbitrary>], iteration_bounds = array<i64: 1, 1, 1>, scalar_prefetch = 0 : i64, scratch_operands = 1 : i64, tpu.core_type = #tpu.core_type<tc>, window_params = [{transform_indices = @transform_0, window_bounds = array<i64: 16, 32>}, {transform_indices = @transform_1, window_bounds = array<i64: 32, 32>}, {transform_indices = @transform_2, window_bounds = array<i64: 16, 32>}]} {
    %c0_i32 = arith.constant 0 : i32
    %0 = arith.cmpi eq, %arg2, %c0_i32 : i32
    %1 = arith.extui %0 : i1 to i32
    %c0_i32_0 = arith.constant 0 : i32
    %2 = arith.cmpi ne, %1, %c0_i32_0 : i32
    scf.if %2 {
      %cst_10 = arith.constant 0.000000e+00 : f32
      %12 = vector.broadcast %cst_10 : f32 to vector<16x32xf32>
      %c0_11 = arith.constant 0 : index
      %c0_12 = arith.constant 0 : index
      %13 = vector.load %arg6[%c0_11, %c0_12] : memref<16x32xf32, #tpu.memory_space<vmem>>, vector<16x32xf32>
      tpu.vector_store %arg6[%c0_11, %c0_12], %12 {strides = array<i32>} : memref<16x32xf32, #tpu.memory_space<vmem>>, vector<16x32xf32>,
    } else {
    }
    %c0 = arith.constant 0 : index
    %c0_1 = arith.constant 0 : index
    %3 = vector.load %arg6[%c0, %c0_1] : memref<16x32xf32, #tpu.memory_space<vmem>>, vector<16x32xf32>
    %c0_2 = arith.constant 0 : index
    %c0_3 = arith.constant 0 : index
    %4 = vector.load %arg3[%c0_2, %c0_3] : memref<16x32xf32, #tpu.memory_space<vmem>>, vector<16x32xf32>
    %c0_4 = arith.constant 0 : index
    %c0_5 = arith.constant 0 : index
    %5 = vector.load %arg4[%c0_4, %c0_5] : memref<32x32xf32, #tpu.memory_space<vmem>>, vector<32x32xf32>
    %cst = arith.constant dense<0.000000e+00> : vector<16x32xf32>
    %6 = tpu.matmul %4, %5, %cst {dimension_numbers = #tpu.dot_dimension_numbers<[1], [0], [0], [1], [0, 0, 1, 1], [], []>} : vector<16x32xf32>, vector<32x32xf32>, vector<16x32xf32> -> vector<16x32xf32>
    %7 = arith.addf %3, %6 : vector<16x32xf32>
    %c0_6 = arith.constant 0 : index
    %c0_7 = arith.constant 0 : index
    %8 = vector.load %arg6[%c0_6, %c0_7] : memref<16x32xf32, #tpu.memory_space<vmem>>, vector<16x32xf32>
    tpu.vector_store %arg6[%c0_6, %c0_7], %7 {strides = array<i32>} : memref<16x32xf32, #tpu.memory_space<vmem>>, vector<16x32xf32>,
    %c0_i32_8 = arith.constant 0 : i32
    %9 = arith.cmpi eq, %arg2, %c0_i32_8 : i32
    %10 = arith.extui %9 : i1 to i32
    %c0_i32_9 = arith.constant 0 : i32
    %11 = arith.cmpi ne, %10, %c0_i32_9 : i32
    scf.if %11 {
      %c0_10 = arith.constant 0 : index
      %c0_11 = arith.constant 0 : index
      %12 = vector.load %arg6[%c0_10, %c0_11] : memref<16x32xf32, #tpu.memory_space<vmem>>, vector<16x32xf32>
      %c0_12 = arith.constant 0 : index
      %c0_13 = arith.constant 0 : index
      %13 = vector.load %arg5[%c0_12, %c0_13] : memref<16x32xf32, #tpu.memory_space<vmem>>, vector<16x32xf32>
      tpu.vector_store %arg5[%c0_12, %c0_13], %12 {strides = array<i32>} : memref<16x32xf32, #tpu.memory_space<vmem>>, vector<16x32xf32>,
    } else {
    }
    return
  }
  func.func @transform_0(%arg0: i32, %arg1: i32, %arg2: i32) -> (i32, i32) {
    %c0_i32 = arith.constant 0 : i32
    return %arg0, %arg2 : i32, i32
  }
  func.func @transform_1(%arg0: i32, %arg1: i32, %arg2: i32) -> (i32, i32) {
    %c0_i32 = arith.constant 0 : i32
    return %arg2, %arg1 : i32, i32
  }
  func.func @transform_2(%arg0: i32, %arg1: i32, %arg2: i32) -> (i32, i32) {
    %c0_i32 = arith.constant 0 : i32
    return %arg0, %arg1 : i32, i32
  }
}

</mosaic_0001>

<bundles_post_ra>
// kernel: tpu_custom_call.1
= control target key start
LH: loop header
LB: loop body
LE: loop exit
PB: predicated region body
PF: predicated region fallthrough
CT: control target
= control target key end

     0   :  { %7 = vsyncpa [#allocation4], 0  ;;  %s257_s0 = inlined_call_operand.hbm [shape: f32[16,32], index: 0, kind: input, shape index: {}]   ;;  %s258_s1 = inlined_call_operand.hbm [shape: f32[32,32], index: 1, kind: input, shape index: {}]   ;;  %s259_s2 = inlined_call_operand.hbm [shape: f32[16,32], index: 2, kind: output, shape index: {}]  }
   0x1   :  { %8 = vsyncpa [#allocation7], 0 }
   0x2   :  { %9 = vsyncpa [#allocation5], 0  ;;  %s14_s11 = sshll.u32 %s257_s0, 4  ;;  %s210_s12 = smov [#allocation3]   ;;  %s15_s11 = int_to_ptr.hbm [resolvable:$true] %s14_s11 }
   0x3   :  { %s16_s13 = sshll.u32 %s210_s12, 4  ;;  %s27_s16 = sshll.u32 %s258_s1, 4  ;;  %s17_s13 = int_to_ptr.vmem [resolvable:$true] %s16_s13  ;;  %s28_s16 = int_to_ptr.hbm [resolvable:$true] %s27_s16 }
   0x4   :  { %s211_s17 = smov 128   ;;  %s212_s18 = smov 8  }
   0x5   :  { %22 = dma.hbm_to_vmem [thread:$0]  %s15_s11, 256, %s17_s13, [#allocation4], %s211_s17, %s211_s17, %s212_s18  }
   0x6   :  { %s213_s19 = smov [#allocation6]  }
   0x7   :  { %s29_s20 = sshll.u32 %s213_s19, 4  ;;  %s30_s20 = int_to_ptr.vmem [resolvable:$true] %s29_s20 }
   0x8   :  { %35 = dma.hbm_to_vmem [thread:$0]  %s28_s16, 512, %s30_s20, [#allocation7], %s211_s17, %s211_s17, %s212_s18  }
   0x9   :  { %204 = dma.done.wait [#allocation4], 256  }
   0xa   :  { %205 = vsyncadd [#allocation4], 4294967040 }
   0xb   :  { %206 = dma.done.wait [#allocation7], 512  }
   0xc   :  { %207 = vsyncadd [#allocation7], 4294966784  ;;  %vm48_vm0 = vcmask 261120   ;;  %v214_v0 = vmov 0.0   ;;  %v58_v1 = vld [vmem:[#allocation6 + $0x18] sm:$0xff]  ;;  %v57_v2 = vld [vmem:[#allocation6 + $0x10] sm:$0xff] }
   0xd   :  { %49 = vst.msk [vmem:[#allocation2] sm:$0xff] %vm48_vm0, %v214_v0  ;;  %78 = vmatpush.msra.mxu0 %v58_v1  ;;  %122 = vmatpush.msra.mxu1 %v58_v1  ;;  %v56_v3 = vld [vmem:[#allocation6 + $0x8] sm:$0xff]  ;;  %v55_v4 = vld [vmem:[#allocation6] sm:$0xff]  ;;  %v53_v5 = vld [vmem:[#allocation3] sm:$0xff]  ;;  %s215_s0 = smov [#allocation8]   ;;  %s106_s23 = sshll.u32 %s259_s2, 4  ;;  %s107_s23 = int_to_ptr.hbm [resolvable:$true] %s106_s23 }
   0xe   :  { %50 = vst.msk [vmem:[#allocation2 + $0x8] sm:$0xff] %vm48_vm0, %v214_v0  ;;  %v54_v6 = vld [vmem:[#allocation3 + $0x8] sm:$0xff]  ;;  %s104_s1 = sshll.u32 %s215_s0, 4  ;;  %s105_s1 = int_to_ptr.vmem [resolvable:$true] %s104_s1 }
   0xf   :  { %79 = vmatpush.msra.mxu0 %v57_v2  ;;  %123 = vmatpush.msra.mxu1 %v57_v2 }
  0x11   :  { %80 = vmatpush.msra.mxu0 %v56_v3  ;;  %124 = vmatpush.msra.mxu1 %v56_v3 }
  0x13   :  { %81 = vmatpush.msra.mxu0 %v55_v4  ;;  %125 = vmatpush.msra.mxu1 %v55_v4 }
  0x14   :  { %120 = vmatmul.msk.f32.vlgmr.msra.gmra.mxu0 %vm48_vm0, %v53_v5  ;;  %121 = vmatmul.msk.f32.vlgmr.msra.gmra.mxu1 %vm48_vm0, %v54_v6  ;;  %v51_v7 = vld [vmem:[#allocation2] sm:$0xff] }
  0x15   :  { %v52_v8 = vld [vmem:[#allocation2 + $0x8] sm:$0xff] }
  0x91   :  { %v83_v9 = vpop.f32.mrf.mxu0  ;;  %v86_v10 = vpop.f32.mrf.mxu1 }
  0x92   :  { %v89_v11 = vadd.f32 %v83_v9, %v51_v7  ;;  %v90_v12 = vadd.f32 %v86_v10, %v52_v8 }
  0x94   :  { %91 = vst.msk [vmem:[#allocation2] sm:$0xff] %vm48_vm0, %v89_v11 }
  0x95   :  { %92 = vst.msk [vmem:[#allocation2 + $0x8] sm:$0xff] %vm48_vm0, %v90_v12 }
  0x9b   :  { %v96_v13 = vld [vmem:[#allocation2] sm:$0xff] }
  0x9c   :  { %v97_v14 = vld [vmem:[#allocation2 + $0x8] sm:$0xff]  ;;  %98 = vst.msk [vmem:[#allocation8] sm:$0xff] %vm48_vm0, %v96_v13 }
  0x9d   :  { %99 = vst.msk [vmem:[#allocation8 + $0x8] sm:$0xff] %vm48_vm0, %v97_v14 }
  0x9e   :  { %112 = dma.vmem_to_hbm [thread:$0]  %s105_s1, 256, %s107_s23, [#allocation5], %s211_s17, %s211_s17, %s212_s18  }
  0x9f   :  { %208 = dma.done.wait [#allocation5], 256  }
  0xa0   :  { %209 = vsyncadd [#allocation5], 4294967040 }
  0xa1   :  { %117 = vsyncpa [#allocation4], 1 }
  0xa2   :  { %118 = vsyncpa [#allocation7], 1 }
  0xa3   :  { %119 = vsyncpa [#allocation5], 1 }

</bundles_post_ra>
